<compile_context>
chip_gen: v5e
topology: v5e:2x2
jax: 0.10.0
libtpu: 0.0.40
codegen_flags: <defaults>
</compile_context>

<pallas_src>
import functools

import jax
import jax.numpy as jnp
from jax.experimental import pallas as pl
from jax.experimental.pallas import tpu as pltpu


def _round_up(x, m):
    return ((x + m - 1) // m) * m


# --------------------------------------------------------------------------
# Fused kernel: emissions for all nodes + full bottom-up inside recursion.
# The score table lives in the output VMEM block for the whole kernel.
# --------------------------------------------------------------------------
def _tree_crf_kernel(h_ref, wT_ref, b_ref, selL_ref, selR_ref, expT_ref,
                     mxT_ref, nbias_ref, out_ref, *, levels, row_chunk):
    # 1) Emission scores for every (padded) node row.  bf16 MXU feed, f32 acc.
    out_ref[...] = (
        jnp.dot(h_ref[...], wT_ref[...], preferred_element_type=jnp.float32)
        + b_ref[...]
    )

    selL = selL_ref[...]      # [Lp, LLp]  bf16 one-hot:  b -> (b*L + c)
    selR = selR_ref[...]      # [Lp, LLp]  bf16 one-hot:  c -> (b*L + c)
    expT = expT_ref[...]      # [LLp, Lp]  bf16  exp(trans[a, bc] - rowmax[a]).T
    mxT = mxT_ref[...]        # [1, Lp]    f32   rowmax[a] of trans
    nbias = nbias_ref[...]    # [1, LLp]   f32   0 on valid bc, -1e30 on padding

    # 2) Bottom-up inside recursion, deepest internal level first (static
    #    unroll over log2(seq) levels, each level chunked to <=row_chunk rows).
    for pb, cb, cnt in levels:
        step = min(cnt, row_chunk)
        # TODO(synk): for very deep trees convert this static chunk loop to a
        # lax.fori_loop to bound code size / live ranges.
        for j in range(0, cnt, step):
            left = out_ref[pl.ds(cb + j, step), :].astype(jnp.bfloat16)
            right = out_ref[pl.ds(cb + cnt + j, step), :].astype(jnp.bfloat16)

            # pairF[m, b*L + c] = left[m, b] + right[m, c]
            # (two accumulated MXU matmuls; no concat temporary)
            pair_f = (
                jnp.dot(left, selL, preferred_element_type=jnp.float32)
                + jnp.dot(right, selR, preferred_element_type=jnp.float32)
                + nbias)                                        # [step, LLp] f32

            # logsumexp over (b, c): exp -> MXU matmul -> log (adds in f32)
            mx = jnp.max(pair_f, axis=-1, keepdims=True)        # [step, 1]
            p = jnp.exp(pair_f - mx).astype(jnp.bfloat16)       # [step, LLp]
            s = jnp.dot(p, expT, preferred_element_type=jnp.float32)  # [step, Lp]

            em = out_ref[pl.ds(pb + j, step), :]                # parents' emissions
            out_ref[pl.ds(pb + j, step), :] = em + mx + mxT + jnp.log(s)
    # NOTE: padded label columns [L:Lp] of internal rows hold finite garbage.
    # This is safe (zero sel rows mask them in later levels) and the wrapper
    # slices them away; do not reuse the raw out block without slicing.


# --------------------------------------------------------------------------
# Forward wrapper: layout permutation + padded constants + single pallas_call
# --------------------------------------------------------------------------
def binary_tree_crf_forward(h, W, b, trans, *, row_chunk=256):
    """h: [N, D] heap-ordered node hidden states (node i has children 2i+1, 2i+2).
    Returns (root inside score [L], inside scores for all nodes [N, L])."""
    N, D = h.shape
    L = trans.shape[0]
    LL = L * L
    Lp = _round_up(L, 128)
    LLp = _round_up(LL, 128)

    seq = (N + 1) // 2
    assert N == 2 * seq - 1 and seq >= 1 and (seq & (seq - 1)) == 0, \
        "perfect binary tree (heap layout) expected"
    depth = seq.bit_length() - 1

    # --- layout: level order, left-children block then right-children block,
    #     each level padded to a multiple of 8 rows (8-sublane slabs).
    level_nodes = [[0]]
    for _ in range(depth):
        prev = level_nodes[-1]
        level_nodes.append([2 * i + 1 for i in prev] + [2 * i + 2 for i in prev])

    level_base = []
    off = 0
    for nodes in level_nodes:
        level_base.append(off)
        off += _round_up(len(nodes), 8)
    N_pad = off

    row_of_heap = [0] * N                      # heap idx -> padded row
    for d, nodes in enumerate(level_nodes):
        for j, hi in enumerate(nodes):
            row_of_heap[hi] = level_base[d] + j

    # internal levels: (parent_base, child_base, count), deepest parents first
    levels = tuple((level_base[d], level_base[d + 1], 2 ** d)
                   for d in range(depth - 1, -1, -1))

    # --- padded parameters / structural constants (built once)
    wT_pad = jnp.zeros((D, Lp), jnp.float32).at[:, :L].set(
        jnp.asarray(W, jnp.float32).T).astype(jnp.bfloat16)
    b_pad = jnp.zeros((1, Lp), jnp.float32).at[0, :L].set(
        jnp.asarray(b, jnp.float32))

    trans_flat = jnp.asarray(trans, jnp.float32).reshape(L, LL)   # [L, LL]
    mxT = jnp.max(trans_flat, axis=1)                             # [L]
    expT = jnp.zeros((LLp, Lp), jnp.float32)
    expT = expT.at[:LL, :L].set(jnp.exp(trans_flat - mxT[:, None]).T)
    # padded label columns: all-ones on valid bc rows -> finite log (no NaN);
    # these columns are sliced away after the call.
    expT = expT.at[:LL, L:].set(1.0)
    expT = expT.astype(jnp.bfloat16)
    mxT_pad = jnp.zeros((1, Lp), jnp.float32).at[0, :L].set(mxT)

    bc = jnp.arange(LLp)
    valid_bc = bc < LL
    lab = jnp.arange(Lp)
    selL = ((lab[:, None] == bc[None, :] // L) & valid_bc[None, :]
            & (lab[:, None] < L)).astype(jnp.bfloat16)            # [Lp, LLp]
    selR = ((lab[:, None] == bc[None, :] % L) & valid_bc[None, :]
            & (lab[:, None] < L)).astype(jnp.bfloat16)            # [Lp, LLp]
    nbias = jnp.where(valid_bc, 0.0, -1e30).astype(jnp.float32).reshape(1, LLp)

    rows = jnp.asarray(row_of_heap, jnp.int32)
    h_perm = jnp.zeros((N_pad, D), jnp.bfloat16).at[rows].set(
        jnp.asarray(h, jnp.float32).astype(jnp.bfloat16))

    # --- VMEM budget: whole-array blocks, no grid -> no double buffering.
    max_rows = min(row_chunk, max(seq // 2, 1))
    buf_bytes = (N_pad * D * 2 + D * Lp * 2 + Lp * 4              # h, wT, b
                 + 2 * Lp * LLp * 2 + LLp * Lp * 2                # selL, selR, expT
                 + Lp * 4 + LLp * 4                               # mxT, nbias
                 + N_pad * Lp * 4)                                # out (score table)
    inter_bytes = 6 * max_rows * LLp * 4                          # pair_f / p live set
    vmem_limit = int(min(max(2 * (buf_bytes + inter_bytes) + (2 << 20), 4 << 20),
                         64 << 20))

    kernel = functools.partial(_tree_crf_kernel, levels=levels,
                               row_chunk=row_chunk)
    vspec = pl.BlockSpec(memory_space=pltpu.MemorySpace.VMEM)
    scores_perm = pl.pallas_call(
        kernel,
        out_shape=jax.ShapeDtypeStruct((N_pad, Lp), jnp.float32),
        in_specs=[vspec] * 8,
        out_specs=vspec,
        compiler_params=pltpu.CompilerParams(vmem_limit_bytes=vmem_limit),
    )(h_perm, wT_pad, b_pad, selL, selR, expT, mxT_pad, nbias)

    # back to heap order, drop label / row padding
    scores_heap = scores_perm[rows, :L]
    return scores_heap[0], scores_heap


# --------------------------------------------------------------------------
# Pure-JAX reference (mirrors the PyTorch recursion literally, heap order)
# --------------------------------------------------------------------------
def reference_forward(h, W, b, trans):
    em = h @ W.T + b[None, :]
    N = h.shape[0]
    L = trans.shape[0]
    n_internal = (N - 1) // 2
    scores = [None] * N
    for i in range(N - 1, -1, -1):
        if i >= n_internal:                          # leaf
            scores[i] = em[i]
        else:
            lc = scores[2 * i + 1].reshape(1, L, 1)
            rc = scores[2 * i + 2].reshape(1, 1, L)
            e = em[i].reshape(L, 1, 1)
            inside = e + rc + lc + trans
            scores[i] = jax.scipy.special.logsumexp(inside.reshape(L, -1), axis=1)
    return scores[0], jnp.stack(scores, axis=0)


if __name__ == "__main__":
    input_size, num_labels, seq = 32, 8, 8           # small, consistent shapes
    num_nodes = 2 * seq - 1                          # perfect binary tree: 15 nodes

    key = jax.random.PRNGKey(0)
    kh, kw, kb, kt = jax.random.split(key, 4)
    # node hidden states (bu_state['h'] for every node, heap order)
    h = jax.random.normal(kh, (num_nodes, input_size), dtype=jnp.float32)
    # pred_layer = nn.Linear(input_size, num_labels)
    W = jax.random.normal(kw, (num_labels, input_size), dtype=jnp.float32) / jnp.sqrt(
        jnp.float32(input_size)
    )
    bvec = jax.random.normal(kb, (num_labels,), dtype=jnp.float32) * 0.1
    # trans_matrix: [L, L, L], ~xavier_normal (std ~ 1/L)
    trans = jax.random.normal(
        kt, (num_labels, num_labels, num_labels), dtype=jnp.float32
    ) / jnp.float32(num_labels)

    root_score, all_scores = binary_tree_crf_forward(h, W, bvec, trans)
    root_score = jax.block_until_ready(root_score)
    all_scores = jax.block_until_ready(all_scores)

    ref_root, ref_all = reference_forward(h, W, bvec, trans)
    assert root_score.shape == (num_labels,)
    assert all_scores.shape == (num_nodes, num_labels)
    # tolerance relaxed vs. full-f32 because MXU operands are fed in bf16
    # (accumulation and all logsumexp adds stay in f32)
    assert jnp.allclose(root_score, ref_root, atol=1e-1, rtol=2e-2)
    assert jnp.allclose(all_scores, ref_all, atol=1e-1, rtol=2e-2)
    print("KERNEL_OK")
</pallas_src>

<mosaic_0001>
module attributes {stable_mosaic.version = 11 : i64} {
  func.func @_tree_crf_kernel(%arg0: memref<32x32xbf16, #tpu.memory_space<vmem>>, %arg1: memref<32x128xbf16, #tpu.memory_space<vmem>>, %arg2: memref<1x128xf32, #tpu.memory_space<vmem>>, %arg3: memref<128x128xbf16, #tpu.memory_space<vmem>>, %arg4: memref<128x128xbf16, #tpu.memory_space<vmem>>, %arg5: memref<128x128xbf16, #tpu.memory_space<vmem>>, %arg6: memref<1x128xf32, #tpu.memory_space<vmem>>, %arg7: memref<1x128xf32, #tpu.memory_space<vmem>>, %arg8: memref<32x128xf32, #tpu.memory_space<vmem>>) attributes {dimension_semantics = [], scalar_prefetch = 0 : i64, scratch_operands = 0 : i64, tpu.core_type = #tpu.core_type<tc>} {
    %c0 = arith.constant 0 : index
    %c0_0 = arith.constant 0 : index
    %0 = vector.load %arg0[%c0, %c0_0] : memref<32x32xbf16, #tpu.memory_space<vmem>>, vector<32x32xbf16>
    %c0_1 = arith.constant 0 : index
    %c0_2 = arith.constant 0 : index
    %1 = vector.load %arg1[%c0_1, %c0_2] : memref<32x128xbf16, #tpu.memory_space<vmem>>, vector<32x128xbf16>
    %cst = arith.constant dense<0.000000e+00> : vector<32x128xf32>
    %2 = tpu.matmul %0, %1, %cst {dimension_numbers = #tpu.dot_dimension_numbers<[1], [0], [0], [1], [0, 0, 1, 1], [], []>} : vector<32x32xbf16>, vector<32x128xbf16>, vector<32x128xf32> -> vector<32x128xf32>
    %c0_3 = arith.constant 0 : index
    %c0_4 = arith.constant 0 : index
    %3 = vector.load %arg2[%c0_3, %c0_4] : memref<1x128xf32, #tpu.memory_space<vmem>>, vector<1x128xf32>
    %4 = vector.broadcast %3 : vector<1x128xf32> to vector<32x128xf32>
    %5 = arith.addf %2, %4 : vector<32x128xf32>
    %c0_5 = arith.constant 0 : index
    %c0_6 = arith.constant 0 : index
    %6 = vector.load %arg8[%c0_5, %c0_6] : memref<32x128xf32, #tpu.memory_space<vmem>>, vector<32x128xf32>
    tpu.vector_store %arg8[%c0_5, %c0_6], %5 {strides = array<i32>} : memref<32x128xf32, #tpu.memory_space<vmem>>, vector<32x128xf32>,
    %c0_7 = arith.constant 0 : index
    %c0_8 = arith.constant 0 : index
    %7 = vector.load %arg3[%c0_7, %c0_8] : memref<128x128xbf16, #tpu.memory_space<vmem>>, vector<128x128xbf16>
    %c0_9 = arith.constant 0 : index
    %c0_10 = arith.constant 0 : index
    %8 = vector.load %arg4[%c0_9, %c0_10] : memref<128x128xbf16, #tpu.memory_space<vmem>>, vector<128x128xbf16>
    %c0_11 = arith.constant 0 : index
    %c0_12 = arith.constant 0 : index
    %9 = vector.load %arg5[%c0_11, %c0_12] : memref<128x128xbf16, #tpu.memory_space<vmem>>, vector<128x128xbf16>
    %c0_13 = arith.constant 0 : index
    %c0_14 = arith.constant 0 : index
    %10 = vector.load %arg6[%c0_13, %c0_14] : memref<1x128xf32, #tpu.memory_space<vmem>>, vector<1x128xf32>
    %c0_15 = arith.constant 0 : index
    %c0_16 = arith.constant 0 : index
    %11 = vector.load %arg7[%c0_15, %c0_16] : memref<1x128xf32, #tpu.memory_space<vmem>>, vector<1x128xf32>
    %c24 = arith.constant 24 : index
    %c0_17 = arith.constant 0 : index
    %12 = vector.load %arg8[%c24, %c0_17] : memref<32x128xf32, #tpu.memory_space<vmem>>, vector<4x128xf32>
    %13 = arith.truncf %12 : vector<4x128xf32> to vector<4x128xbf16>
    %c28 = arith.constant 28 : index
    %c0_18 = arith.constant 0 : index
    %14 = vector.load %arg8[%c28, %c0_18] : memref<32x128xf32, #tpu.memory_space<vmem>>, vector<4x128xf32>
    %15 = arith.truncf %14 : vector<4x128xf32> to vector<4x128xbf16>
    %cst_19 = arith.constant dense<0.000000e+00> : vector<4x128xf32>
    %16 = tpu.matmul %13, %7, %cst_19 {dimension_numbers = #tpu.dot_dimension_numbers<[1], [0], [0], [1], [0, 0, 1, 1], [], []>} : vector<4x128xbf16>, vector<128x128xbf16>, vector<4x128xf32> -> vector<4x128xf32>
    %cst_20 = arith.constant dense<0.000000e+00> : vector<4x128xf32>
    %17 = tpu.matmul %15, %8, %cst_20 {dimension_numbers = #tpu.dot_dimension_numbers<[1], [0], [0], [1], [0, 0, 1, 1], [], []>} : vector<4x128xbf16>, vector<128x128xbf16>, vector<4x128xf32> -> vector<4x128xf32>
    %18 = arith.addf %16, %17 : vector<4x128xf32>
    %19 = vector.broadcast %11 : vector<1x128xf32> to vector<4x128xf32>
    %20 = arith.addf %18, %19 : vector<4x128xf32>
    %cst_21 = arith.constant dense<0xFF800000> : vector<4xf32>
    %21 = vector.multi_reduction <maximumf>, %20, %cst_21 [1] : vector<4x128xf32> to vector<4xf32>
    %22 = vector.shape_cast %21 : vector<4xf32> to vector<4x1xf32>
    %23 = vector.broadcast %22 : vector<4x1xf32> to vector<4x128xf32>
    %24 = arith.subf %20, %23 : vector<4x128xf32>
    %25 = math.exp %24 : vector<4x128xf32>
    %26 = arith.truncf %25 : vector<4x128xf32> to vector<4x128xbf16>
    %cst_22 = arith.constant dense<0.000000e+00> : vector<4x128xf32>
    %27 = tpu.matmul %26, %9, %cst_22 {dimension_numbers = #tpu.dot_dimension_numbers<[1], [0], [0], [1], [0, 0, 1, 1], [], []>} : vector<4x128xbf16>, vector<128x128xbf16>, vector<4x128xf32> -> vector<4x128xf32>
    %c16 = arith.constant 16 : index
    %c0_23 = arith.constant 0 : index
    %28 = vector.load %arg8[%c16, %c0_23] : memref<32x128xf32, #tpu.memory_space<vmem>>, vector<4x128xf32>
    %29 = vector.broadcast %22 : vector<4x1xf32> to vector<4x128xf32>
    %30 = arith.addf %28, %29 : vector<4x128xf32>
    %31 = vector.broadcast %10 : vector<1x128xf32> to vector<4x128xf32>
    %32 = arith.addf %30, %31 : vector<4x128xf32>
    %33 = math.log %27 : vector<4x128xf32>
    %34 = arith.addf %32, %33 : vector<4x128xf32>
    %c16_24 = arith.constant 16 : index
    %c0_25 = arith.constant 0 : index
    %35 = vector.load %arg8[%c16_24, %c0_25] : memref<32x128xf32, #tpu.memory_space<vmem>>, vector<4x128xf32>
    tpu.vector_store %arg8[%c16_24, %c0_25], %34 {strides = array<i32>} : memref<32x128xf32, #tpu.memory_space<vmem>>, vector<4x128xf32>,
    %c16_26 = arith.constant 16 : index
    %c0_27 = arith.constant 0 : index
    %36 = vector.load %arg8[%c16_26, %c0_27] : memref<32x128xf32, #tpu.memory_space<vmem>>, vector<2x128xf32>
    %37 = arith.truncf %36 : vector<2x128xf32> to vector<2x128xbf16>
    %c18 = arith.constant 18 : index
    %c0_28 = arith.constant 0 : index
    %38 = vector.load %arg8[%c18, %c0_28] : memref<32x128xf32, #tpu.memory_space<vmem>>, vector<2x128xf32>
    %39 = arith.truncf %38 : vector<2x128xf32> to vector<2x128xbf16>
    %cst_29 = arith.constant dense<0.000000e+00> : vector<2x128xf32>
    %40 = tpu.matmul %37, %7, %cst_29 {dimension_numbers = #tpu.dot_dimension_numbers<[1], [0], [0], [1], [0, 0, 1, 1], [], []>} : vector<2x128xbf16>, vector<128x128xbf16>, vector<2x128xf32> -> vector<2x128xf32>
    %cst_30 = arith.constant dense<0.000000e+00> : vector<2x128xf32>
    %41 = tpu.matmul %39, %8, %cst_30 {dimension_numbers = #tpu.dot_dimension_numbers<[1], [0], [0], [1], [0, 0, 1, 1], [], []>} : vector<2x128xbf16>, vector<128x128xbf16>, vector<2x128xf32> -> vector<2x128xf32>
    %42 = arith.addf %40, %41 : vector<2x128xf32>
    %43 = vector.broadcast %11 : vector<1x128xf32> to vector<2x128xf32>
    %44 = arith.addf %42, %43 : vector<2x128xf32>
    %cst_31 = arith.constant dense<0xFF800000> : vector<2xf32>
    %45 = vector.multi_reduction <maximumf>, %44, %cst_31 [1] : vector<2x128xf32> to vector<2xf32>
    %46 = vector.shape_cast %45 : vector<2xf32> to vector<2x1xf32>
    %47 = vector.broadcast %46 : vector<2x1xf32> to vector<2x128xf32>
    %48 = arith.subf %44, %47 : vector<2x128xf32>
    %49 = math.exp %48 : vector<2x128xf32>
    %50 = arith.truncf %49 : vector<2x128xf32> to vector<2x128xbf16>
    %cst_32 = arith.constant dense<0.000000e+00> : vector<2x128xf32>
    %51 = tpu.matmul %50, %9, %cst_32 {dimension_numbers = #tpu.dot_dimension_numbers<[1], [0], [0], [1], [0, 0, 1, 1], [], []>} : vector<2x128xbf16>, vector<128x128xbf16>, vector<2x128xf32> -> vector<2x128xf32>
    %c8 = arith.constant 8 : index
    %c0_33 = arith.constant 0 : index
    %52 = vector.load %arg8[%c8, %c0_33] : memref<32x128xf32, #tpu.memory_space<vmem>>, vector<2x128xf32>
    %53 = vector.broadcast %46 : vector<2x1xf32> to vector<2x128xf32>
    %54 = arith.addf %52, %53 : vector<2x128xf32>
    %55 = vector.broadcast %10 : vector<1x128xf32> to vector<2x128xf32>
    %56 = arith.addf %54, %55 : vector<2x128xf32>
    %57 = math.log %51 : vector<2x128xf32>
    %58 = arith.addf %56, %57 : vector<2x128xf32>
    %c8_34 = arith.constant 8 : index
    %c0_35 = arith.constant 0 : index
    %59 = vector.load %arg8[%c8_34, %c0_35] : memref<32x128xf32, #tpu.memory_space<vmem>>, vector<2x128xf32>
    tpu.vector_store %arg8[%c8_34, %c0_35], %58 {strides = array<i32>} : memref<32x128xf32, #tpu.memory_space<vmem>>, vector<2x128xf32>,
    %c8_36 = arith.constant 8 : index
    %c0_37 = arith.constant 0 : index
    %60 = vector.load %arg8[%c8_36, %c0_37] : memref<32x128xf32, #tpu.memory_space<vmem>>, vector<1x128xf32>
    %61 = arith.truncf %60 : vector<1x128xf32> to vector<1x128xbf16>
    %c9 = arith.constant 9 : index
    %c0_38 = arith.constant 0 : index
    %62 = vector.load %arg8[%c9, %c0_38] : memref<32x128xf32, #tpu.memory_space<vmem>>, vector<1x128xf32>
    %63 = arith.truncf %62 : vector<1x128xf32> to vector<1x128xbf16>
    %cst_39 = arith.constant dense<0.000000e+00> : vector<1x128xf32>
    %64 = tpu.matmul %61, %7, %cst_39 {dimension_numbers = #tpu.dot_dimension_numbers<[1], [0], [0], [1], [0, 0, 1, 1], [], []>} : vector<1x128xbf16>, vector<128x128xbf16>, vector<1x128xf32> -> vector<1x128xf32>
    %cst_40 = arith.constant dense<0.000000e+00> : vector<1x128xf32>
    %65 = tpu.matmul %63, %8, %cst_40 {dimension_numbers = #tpu.dot_dimension_numbers<[1], [0], [0], [1], [0, 0, 1, 1], [], []>} : vector<1x128xbf16>, vector<128x128xbf16>, vector<1x128xf32> -> vector<1x128xf32>
    %66 = arith.addf %64, %65 : vector<1x128xf32>
    %67 = arith.addf %66, %11 : vector<1x128xf32>
    %cst_41 = arith.constant dense<0xFF800000> : vector<1xf32>
    %68 = vector.multi_reduction <maximumf>, %67, %cst_41 [1] : vector<1x128xf32> to vector<1xf32>
    %69 = vector.shape_cast %68 : vector<1xf32> to vector<1x1xf32>
    %70 = vector.broadcast %69 : vector<1x1xf32> to vector<1x128xf32>
    %71 = arith.subf %67, %70 : vector<1x128xf32>
    %72 = math.exp %71 : vector<1x128xf32>
    %73 = arith.truncf %72 : vector<1x128xf32> to vector<1x128xbf16>
    %cst_42 = arith.constant dense<0.000000e+00> : vector<1x128xf32>
    %74 = tpu.matmul %73, %9, %cst_42 {dimension_numbers = #tpu.dot_dimension_numbers<[1], [0], [0], [1], [0, 0, 1, 1], [], []>} : vector<1x128xbf16>, vector<128x128xbf16>, vector<1x128xf32> -> vector<1x128xf32>
    %c0_43 = arith.constant 0 : index
    %c0_44 = arith.constant 0 : index
    %75 = vector.load %arg8[%c0_43, %c0_44] : memref<32x128xf32, #tpu.memory_space<vmem>>, vector<1x128xf32>
    %76 = vector.broadcast %69 : vector<1x1xf32> to vector<1x128xf32>
    %77 = arith.addf %75, %76 : vector<1x128xf32>
    %78 = arith.addf %77, %10 : vector<1x128xf32>
    %79 = math.log %74 : vector<1x128xf32>
    %80 = arith.addf %78, %79 : vector<1x128xf32>
    %c0_45 = arith.constant 0 : index
    %c0_46 = arith.constant 0 : index
    %81 = vector.load %arg8[%c0_45, %c0_46] : memref<32x128xf32, #tpu.memory_space<vmem>>, vector<1x128xf32>
    tpu.vector_store %arg8[%c0_45, %c0_46], %80 {strides = array<i32>} : memref<32x128xf32, #tpu.memory_space<vmem>>, vector<1x128xf32>,
    return
  }
}

</mosaic_0001>

<bundles_post_ra>
// kernel: tpu_custom_call.1
= control target key start
LH: loop header
LB: loop body
LE: loop exit
PB: predicated region body
PF: predicated region fallthrough
CT: control target
= control target key end

     0   :  { %13 = vsyncpa [#allocation3], 0  ;;  %s1018_s0 = inlined_call_operand.hbm [shape: bf16[32,32], index: 0, kind: input, shape index: {}]   ;;  %s1019_s1 = inlined_call_operand.hbm [shape: bf16[32,128], index: 1, kind: input, shape index: {}]   ;;  %s1020_s2 = inlined_call_operand.vmem [shape: f32[1,128], index: 2, kind: input, shape index: {}]   ;;  %s1021_s3 = inlined_call_operand.hbm [shape: bf16[128,128], index: 3, kind: input, shape index: {}]   ;;  %s1022_s4 = inlined_call_operand.hbm [shape: bf16[128,128], index: 4, kind: input, shape index: {}]   ;;  %s1023_s5 = inlined_call_operand.hbm [shape: bf16[128,128], index: 5, kind: input, shape index: {}]   ;;  %s1024_s6 = inlined_call_operand.vmem [shape: f32[1,128], index: 6, kind: input, shape index: {}]   ;;  %s1025_s7 = inlined_call_operand.vmem [shape: f32[1,128], index: 7, kind: input, shape index: {}]   ;;  %s1026_s8 = inlined_call_operand.hbm [shape: f32[32,128], index: 8, kind: output, shape index: {}]  }
   0x1   :  { %14 = vsyncpa [#allocation6], 0 }
   0x2   :  { %15 = vsyncpa [#allocation9], 0 }
   0x3   :  { %16 = vsyncpa [#allocation4], 0  ;;  %s34_s29 = sshll.u32 %s1019_s1, 4  ;;  %s890_s30 = smov [#allocation5]   ;;  %s35_s29 = int_to_ptr.hbm [resolvable:$true] %s34_s29 }
   0x4   :  { %s36_s9 = sshll.u32 %s890_s30, 4  ;;  %s62_s12 = sshll.u32 %s1022_s4, 4  ;;  %s37_s9 = int_to_ptr.vmem [resolvable:$true] %s36_s9  ;;  %s63_s12 = int_to_ptr.hbm [resolvable:$true] %s62_s12 }
   0x5   :  { %s891_s13 = smov 64   ;;  %s892_s14 = smov 4  }
   0x6   :  { %42 = dma.hbm_to_vmem [thread:$0]  %s35_s29, 256, %s37_s9, [#allocation6], %s891_s13, %s891_s13, %s892_s14  }
   0x7   :  { %s893_s15 = smov [#allocation8]   ;;  %s21_s19 = sshll.u32 %s1018_s0, 4  ;;  %s22_s19 = int_to_ptr.hbm [resolvable:$true] %s21_s19 }
   0x8   :  { %s64_s16 = sshll.u32 %s893_s15, 4  ;;  %s49_s21 = sshll.u32 %s1021_s3, 4  ;;  %s65_s16 = int_to_ptr.vmem [resolvable:$true] %s64_s16  ;;  %s50_s21 = int_to_ptr.hbm [resolvable:$true] %s49_s21 }
   0x9   :  { %70 = dma.hbm_to_vmem [thread:$0]  %s63_s12, 1024, %s65_s16, [#allocation9], %s891_s13, %s891_s13, %s892_s14  }
   0xa   :  { %s894_s22 = smov [#allocation2]   ;;  %s895_s4 = smov [#allocation7]  }
   0xb   :  { %s23_s23 = sshll.u32 %s894_s22, 4  ;;  %s51_s24 = sshll.u32 %s895_s4, 4  ;;  %s24_s23 = int_to_ptr.vmem [resolvable:$true] %s23_s23  ;;  %s52_s24 = int_to_ptr.vmem [resolvable:$true] %s51_s24 }
   0xc   :  { %29 = dma.hbm_to_vmem [thread:$0]  %s22_s19, 256, %s24_s23, [#allocation3], %s891_s13, %s891_s13, %s892_s14  }
   0xd   :  { %s75_s27 = sshll.u32 %s1023_s5, 4  ;;  %s896_s0 = smov [#allocation10]   ;;  %s76_s27 = int_to_ptr.hbm [resolvable:$true] %s75_s27 }
   0xe   :  { %57 = dma.hbm_to_vmem [thread:$0]  %s50_s21, 1024, %s52_s24, [#allocation6], %s891_s13, %s891_s13, %s892_s14  }
   0xf   :  { %s77_s28 = sshll.u32 %s896_s0, 4  ;;  %s78_s28 = int_to_ptr.vmem [resolvable:$true] %s77_s28 }
  0x10   :  { %83 = dma.hbm_to_vmem [thread:$0]  %s76_s27, 1024, %s78_s28, [#allocation9], %s891_s13, %s891_s13, %s892_s14  }
  0x11   :  { %882 = dma.done.wait [#allocation3], 256  }
  0x12   :  { %883 = vsyncadd [#allocation3], 4294967040 }
  0x13   :  { %884 = dma.done.wait [#allocation6], 1280  }
  0x14   :  { %885 = vsyncadd [#allocation6], 4294966016 }
  0x15   :  { %886 = dma.done.wait [#allocation9], 2048  }
  0x16   :  { %887 = vsyncadd [#allocation9], 4294965248  ;;  %v688_v0 = vld [vmem:[#allocation5 + $0x8] sm:$0xff]  ;;  %v687_v1 = vld [vmem:[#allocation5] sm:$0xff]  ;;  %vm143_vm0 = vcmask 261120   ;;  %vm353_vm1 = vcmask 1043456  }
  0x17   :  { %156 = vmatpush.bf16.msra.mxu0 %v688_v0  ;;  %v685_v2 = vld [vmem:[#allocation2] sm:$0xff]  ;;  %v686_v3 = vld [vmem:[#allocation2 + $0x8] sm:$0xff]  ;;  %v960_v4 = vld [vmem:[#allocation8 + $0x38] sm:$0xff]  ;;  %vm463_vm2 = vcmask 1041408   ;;  %vm522_vm3 = vcmask 1040384   ;;  %s897_s13 = smov [#allocation11]  }
  0x18   :  { %v696_v5 = vld [vmem:[#allocation7 + $0x38] sm:$0xff]  ;;  %275 = vmatpush.bf16.msra.mxu1 %v960_v4  ;;  %v964_v6 = vld [vmem:[#allocation8 + $0x30] sm:$0xff]  ;;  %v967_v8 = vld [vmem:[#allocation8 + $0x28] sm:$0xff]  ;;  %s554_s14 = sshll.u32 %s897_s13, 4  ;;  %s556_s17 = sshll.u32 %s1026_s8, 4  ;;  %s555_s14 = int_to_ptr.vmem [resolvable:$true] %s554_s14  ;;  %s557_s17 = int_to_ptr.hbm [resolvable:$true] %s556_s17 }
  0x19   :  { %336 = vmatpush.bf16.msra.mxu2 %v696_v5  ;;  %v695_v7 = vld [vmem:[#allocation7 + $0x30] sm:$0xff]  ;;  %v694_v9 = vld [vmem:[#allocation7 + $0x28] sm:$0xff]  ;;  %v972_v10 = vld [vmem:[#allocation8 + $0x20] sm:$0xff]  ;;  %s898_s18 = smov 128   ;;  %s899_s19 = smov 8  }
  0x1a   :  { %v693_v11 = vld [vmem:[#allocation7 + $0x20] sm:$0xff]  ;;  %v975_v12 = vld [vmem:[#allocation8 + $0x18] sm:$0xff]  ;;  %v980_v14 = vld [vmem:[#allocation8 + $0x10] sm:$0xff] }
  0x1b   :  { %157 = vmatpush.bf16.msra.mxu0 %v687_v1  ;;  %v692_v13 = vld [vmem:[#allocation7 + $0x18] sm:$0xff]  ;;  %v691_v15 = vld [vmem:[#allocation7 + $0x10] sm:$0xff]  ;;  %v983_v16 = vld [vmem:[#allocation8 + $0x8] sm:$0xff] }
  0x1c   :  { %276 = vmatpush.bf16.msra.mxu1 %v964_v6  ;;  %v690_v17 = vld [vmem:[#allocation7 + $0x8] sm:$0xff]  ;;  %v723_v18 = vld [vmem:[%s1020_s2] ss:$0 sm:$0xff]  ;;  %v712_v33 = vld [vmem:[#allocation10 + $0x38] sm:$0xff] }
  0x1d   :  { %337 = vmatpush.bf16.msra.mxu2 %v695_v7  ;;  %v990_v19 = vld [vmem:[#allocation8] sm:$0xff]  ;;  %409 = vmatpush.bf16.msra.mxu3 %v712_v33  ;;  %v711_v34 = vld [vmem:[#allocation10 + $0x30] sm:$0xff]  ;;  %v710_v35 = vld [vmem:[#allocation10 + $0x28] sm:$0xff] }
  0x1e   :  { %587 = vmatmul.msk.bf16.vlgmr.msra.gmra.mxu0 %vm143_vm0, %v685_v2  ;;  %v689_v20 = vld [vmem:[#allocation7] sm:$0xff]  ;;  %v708_v37 = vld [vmem:[#allocation10 + $0x18] sm:$0xff]  ;;  %v707_v46 = vld [vmem:[#allocation10 + $0x10] sm:$0xff] }
  0x1f   :  { %436 = vmatpush.bf16.msrb.mxu0 %v960_v4  ;;  %v709_v36 = vld [vmem:[#allocation10 + $0x20] sm:$0xff]  ;;  %v706_v47 = vld [vmem:[#allocation10 + $0x8] sm:$0xff] }
  0x20   :  { %277 = vmatpush.bf16.msra.mxu1 %v967_v8  ;;  %v724_v39 = vld [vmem:[%s1025_s7] ss:$0 sm:$0xff] }
  0x21   :  { %338 = vmatpush.bf16.msra.mxu2 %v694_v9  ;;  %410 = vmatpush.bf16.msra.mxu3 %v711_v34  ;;  %v705_v48 = vld [vmem:[#allocation10] sm:$0xff] }
  0x22   :  { %v725_v56 = vld [vmem:[%s1024_s6] ss:$0 sm:$0xff] }
  0x23   :  { %437 = vmatpush.bf16.msrb.mxu0 %v964_v6 }
  0x24   :  { %278 = vmatpush.bf16.msra.mxu1 %v972_v10 }
  0x25   :  { %339 = vmatpush.bf16.msra.mxu2 %v693_v11  ;;  %411 = vmatpush.bf16.msra.mxu3 %v710_v35 }
  0x27   :  { %438 = vmatpush.bf16.msrb.mxu0 %v967_v8 }
  0x28   :  { %279 = vmatpush.bf16.msra.mxu1 %v975_v12 }
  0x29   :  { %340 = vmatpush.bf16.msra.mxu2 %v692_v13  ;;  %412 = vmatpush.bf16.msra.mxu3 %v709_v36 }
  0x2b   :  { %439 = vmatpush.bf16.msrb.mxu0 %v972_v10 }
  0x2c   :  { %280 = vmatpush.bf16.msra.mxu1 %v980_v14 }
  0x2d   :  { %341 = vmatpush.bf16.msra.mxu2 %v691_v15  ;;  %413 = vmatpush.bf16.msra.mxu3 %v708_v37 }
  0x2e   :  { %588 = vmatmul.msk.bf16.gmra.mxu0 %vm143_vm0, %v686_v3 }
  0x2f   :  { %440 = vmatpush.bf16.msrb.mxu0 %v975_v12 }
  0x30   :  { %281 = vmatpush.bf16.msra.mxu1 %v983_v16 }
  0x31   :  { %342 = vmatpush.bf16.msra.mxu2 %v690_v17  ;;  %414 = vmatpush.bf16.msra.mxu3 %v707_v46 }
  0x33   :  { %441 = vmatpush.bf16.msrb.mxu0 %v980_v14 }
  0x34   :  { %282 = vmatpush.bf16.msra.mxu1 %v990_v19 }
  0x35   :  { %343 = vmatpush.bf16.msra.mxu2 %v689_v20  ;;  %415 = vmatpush.bf16.msra.mxu3 %v706_v47 }
  0x37   :  { %442 = vmatpush.bf16.msrb.mxu0 %v983_v16 }
  0x38   :  { %449 = vmatpush.bf16.msrb.mxu1 %v696_v5 }
  0x39   :  { %471 = vmatpush.bf16.msrb.mxu2 %v712_v33  ;;  %416 = vmatpush.bf16.msra.mxu3 %v705_v48 }
  0x3b   :  { %443 = vmatpush.bf16.msrb.mxu0 %v990_v19 }
  0x3c   :  { %450 = vmatpush.bf16.msrb.mxu1 %v695_v7 }
  0x3d   :  { %472 = vmatpush.bf16.msrb.mxu2 %v711_v34  ;;  %495 = vmatpush.bf16.msrb.mxu3 %v960_v4 }
  0x3f   :  { %508 = vmatpush.bf16.msra.mxu0 %v696_v5 }
  0x40   :  { %451 = vmatpush.bf16.msrb.mxu1 %v694_v9 }
  0x41   :  { %473 = vmatpush.bf16.msrb.mxu2 %v710_v35  ;;  %496 = vmatpush.bf16.msrb.mxu3 %v964_v6 }
  0x43   :  { %509 = vmatpush.bf16.msra.mxu0 %v695_v7 }
  0x44   :  { %452 = vmatpush.bf16.msrb.mxu1 %v693_v11 }
  0x45   :  { %474 = vmatpush.bf16.msrb.mxu2 %v709_v36  ;;  %497 = vmatpush.bf16.msrb.mxu3 %v967_v8 }
  0x47   :  { %510 = vmatpush.bf16.msra.mxu0 %v694_v9 }
  0x48   :  { %453 = vmatpush.bf16.msrb.mxu1 %v692_v13 }
  0x49   :  { %475 = vmatpush.bf16.msrb.mxu2 %v708_v37  ;;  %498 = vmatpush.bf16.msrb.mxu3 %v972_v10 }
  0x4b   :  { %511 = vmatpush.bf16.msra.mxu0 %v693_v11 }
  0x4c   :  { %454 = vmatpush.bf16.msrb.mxu1 %v691_v15 }
  0x4d   :  { %476 = vmatpush.bf16.msrb.mxu2 %v707_v46  ;;  %499 = vmatpush.bf16.msrb.mxu3 %v975_v12 }
  0x4f   :  { %512 = vmatpush.bf16.msra.mxu0 %v692_v13 }
  0x50   :  { %455 = vmatpush.bf16.msrb.mxu1 %v690_v17 }
  0x51   :  { %477 = vmatpush.bf16.msrb.mxu2 %v706_v47  ;;  %500 = vmatpush.bf16.msrb.mxu3 %v980_v14 }
  0x53   :  { %513 = vmatpush.bf16.msra.mxu0 %v691_v15 }
  0x54   :  { %456 = vmatpush.bf16.msrb.mxu1 %v689_v20 }
  0x55   :  { %478 = vmatpush.bf16.msrb.mxu2 %v705_v48  ;;  %501 = vmatpush.bf16.msrb.mxu3 %v983_v16 }
  0x57   :  { %514 = vmatpush.bf16.msra.mxu0 %v690_v17 }
  0x59   :  { %502 = vmatpush.bf16.msrb.mxu3 %v990_v19 }
  0x5b   :  { %515 = vmatpush.bf16.msra.mxu0 %v689_v20 }
  0x9b   :  { %v159_v21 = vpop.f32.mrf.mxu0 }
  0x9c   :  { %v160_v22 = vadd.f32 %v723_v18, %v159_v21 }
  0x9e   :  { %169 = vst [vmem:[#allocation11] sm:$0xff] %v160_v22 }
  0xa3   :  { %v161_v23 = vpop.f32.mrf.mxu0 }
  0xa4   :  { %v162_v24 = vadd.f32 %v723_v18, %v161_v23 }
  0xa6   :  { %170 = vst [vmem:[#allocation11 + $0x8] sm:$0xff] %v162_v24 }
  0xab   :  { %v164_v25 = vpop.f32.mrf.mxu0 }
  0xac   :  { %v165_v26 = vadd.f32 %v723_v18, %v164_v25 }
  0xad   :  { %v484_v16 = vld [vmem:[#allocation11 + $0x8] sm:$0x3] }
  0xae   :  { %171 = vst [vmem:[#allocation11 + $0x10] sm:$0xff] %v165_v26 }
  0xb3   :  { %v166_v27 = vpop.f32.mrf.mxu0 }
  0xb4   :  { %v167_v28 = vadd.f32 %v723_v18, %v166_v27 }
  0xb5   :  { %v422_v55 = vld [vmem:[#allocation11 + $0x10] sm:$0xf] }
  0xb6   :  { %172 = vst [vmem:[#allocation11 + $0x18] sm:$0xff] %v167_v28  ;;  %v222_v28 = vld [vmem:[%s1025_s7] sm:$0x1] }
  0xbd   :  { %v225_v29 = vld [vmem:[#allocation11 + $0x1c] sm:$0xf]  ;;  %v223_v30 = vld [vmem:[#allocation11 + $0x18] sm:$0xf] }
  0xbe   :  { %v226_v31 = vpack.c.bf16 %v225_v29, %v225_v29  ;;  %v224_v32 = vpack.c.bf16 %v223_v30, %v223_v30 }
  0xc0   :  { %283 = vmatmul.bf16.vlgmr.msra.gmra.mxu1 %v226_v31  ;;  %344 = vmatmul.bf16.vlgmr.msra.gmra.mxu2 %v224_v32 }
  0xc1   :  { %530 = vmatpush.bf16.msra.mxu1 %v712_v33 }
  0xc5   :  { %531 = vmatpush.bf16.msra.mxu1 %v711_v34 }
  0xc9   :  { %532 = vmatpush.bf16.msra.mxu1 %v710_v35 }
  0xcd   :  { %533 = vmatpush.bf16.msra.mxu1 %v709_v36 }
  0xd1   :  { %534 = vmatpush.bf16.msra.mxu1 %v708_v37 }
  0xd5   :  { %535 = vmatpush.bf16.msra.mxu1 %v707_v46 }
  0xd9   :  { %536 = vmatpush.bf16.msra.mxu1 %v706_v47 }
  0xdd   :  { %537 = vmatpush.bf16.msra.mxu1 %v705_v48 }
 0x13d   :  { %v284_v38 = vpop.f32.mrf.mxu1 }
 0x143   :  { %v345_v40 = vpop.f32.mrf.mxu2 }
 0x144   :  { %v346_v41 = vadd.f32 %v345_v40, %v284_v38 }
 0x145   :  { %v286_v42 = vpop.f32.mrf.mxu1 }
 0x146   :  { %v352_v43 = vadd.f32 %v724_v39, %v346_v41  ;;  %v543_v41 = vld [vmem:[#allocation11] sm:$0x1] }
 0x148   :  { %v354_v44 = vsel %vm353_vm1, %v352_v43, -inf }
 0x149   :  { %355 = vmax.xlane.f32.xlu0 %v354_v44 }
 0x14b   :  { %v347_v45 = vpop.f32.mrf.mxu2 }
 0x1bc   :  { %v356_v49 = vpop.xlane.xlu0 %355 }
 0x1bd   :  { %v357_v50 = vsub.f32 %v352_v43, %v356_v49  ;;  %v423_v57 = vadd.f32 %v422_v55, %v356_v49  ;;  %v221_v43 = vld [vmem:[%s1024_s6] sm:$0x1] }
 0x1bf   :  { %v358_v51 = vmul.f32 1.442695, %v357_v50  ;;  %v427_v59 = vadd.f32 %v725_v56, %v423_v57 }
 0x1c1   :  { %726 = vpow2.f32 %v358_v51 }
 0x1c7   :  { %v727_v52 = vpop.eup %726 }
 0x1c8   :  { %v360_v53 = vpack.c.bf16 %v727_v52, %v727_v52 }
 0x1ca   :  { %417 = vmatmul.bf16.vlgmr.msra.gmra.mxu3 %v360_v53 }
 0x24d   :  { %v418_v54 = vpop.f32.mrf.mxu3 }
 0x24e   :  { %728 = vlog2.f32 %v418_v54 }
 0x254   :  { %v729_v58 = vpop.eup %728 }
 0x255   :  { %v429_v60 = vmul.f32 0.6931472, %v729_v58  ;;  %v420_v61 = vpop.f32.mrf.mxu3 }
 0x257   :  { %v430_v62 = vadd.f32 %v429_v60, %v427_v59 }
 0x259   :  { %431 = vst [vmem:[#allocation11 + $0x10] sm:$0xf] %v430_v62 }
 0x260   :  { %v434_v63 = vld [vmem:[#allocation11 + $0x12] sm:$0x3]  ;;  %v432_v0 = vld [vmem:[#allocation11 + $0x10] sm:$0x3] }
 0x261   :  { %v435_v1 = vpack.c.bf16 %v434_v63, %v434_v63  ;;  %v433_v2 = vpack.c.bf16 %v432_v0, %v432_v0 }
 0x263   :  { %444 = vmatmul.bf16.vlgmr.msrb.gmra.mxu0 %v435_v1  ;;  %457 = vmatmul.bf16.vlgmr.msrb.gmra.mxu1 %v433_v2 }
 0x2e0   :  { %v445_v3 = vpop.f32.mrf.mxu0  ;;  %v458_v4 = vpop.f32.mrf.mxu1 }
 0x2e1   :  { %v459_v5 = vadd.f32 %v458_v4, %v445_v3 }
 0x2e3   :  { %v462_v6 = vadd.f32 %v724_v39, %v459_v5 }
 0x2e5   :  { %v464_v7 = vsel %vm463_vm2, %v462_v6, -inf }
 0x2e6   :  { %465 = vmax.xlane.f32.xlu0 %v464_v7 }
 0x2e8   :  { %v447_v8 = vpop.f32.mrf.mxu0  ;;  %v460_v9 = vpop.f32.mrf.mxu1 }
 0x359   :  { %v466_v10 = vpop.xlane.xlu0 %465 }
 0x35a   :  { %v467_v11 = vsub.f32 %v462_v6, %v466_v10  ;;  %v485_v17 = vadd.f32 %v484_v16, %v466_v10 }
 0x35c   :  { %v468_v12 = vmul.f32 1.442695, %v467_v11  ;;  %v486_v19 = vadd.f32 %v725_v56, %v485_v17 }
 0x35e   :  { %730 = vpow2.f32 %v468_v12 }
 0x364   :  { %v731_v13 = vpop.eup %730 }
 0x365   :  { %v470_v14 = vpack.c.bf16 %v731_v13, %v731_v13 }
 0x367   :  { %479 = vmatmul.bf16.vlgmr.msrb.gmra.mxu2 %v470_v14 }
 0x3ea   :  { %v480_v15 = vpop.f32.mrf.mxu2 }
 0x3eb   :  { %732 = vlog2.f32 %v480_v15 }
 0x3f1   :  { %v733_v18 = vpop.eup %732 }
 0x3f2   :  { %v488_v20 = vmul.f32 0.6931472, %v733_v18  ;;  %v482_v21 = vpop.f32.mrf.mxu2 }
 0x3f4   :  { %v489_v22 = vadd.f32 %v488_v20, %v486_v19 }
 0x3f6   :  { %490 = vst [vmem:[#allocation11 + $0x8] sm:$0x3] %v489_v22 }
 0x3fd   :  { %v493_v23 = vld [vmem:[#allocation11 + $0x9] sm:$0x1]  ;;  %v491_v24 = vld [vmem:[#allocation11 + $0x8] sm:$0x1] }
 0x3fe   :  { %v494_v25 = vpack.c.bf16 %v493_v23, %v493_v23  ;;  %v492_v26 = vpack.c.bf16 %v491_v24, %v491_v24 }
 0x400   :  { %503 = vmatmul.bf16.vlgmr.msrb.gmra.mxu3 %v494_v25  ;;  %516 = vmatmul.bf16.vlgmr.msra.gmra.mxu0 %v492_v26 }
 0x47d   :  { %v517_v27 = vpop.f32.mrf.mxu0 }
 0x483   :  { %v504_v29 = vpop.f32.mrf.mxu3 }
 0x484   :  { %v518_v30 = vadd.f32 %v517_v27, %v504_v29 }
 0x485   :  { %v519_v31 = vpop.f32.mrf.mxu0 }
 0x486   :  { %v521_v32 = vadd.f32 %v518_v30, %v222_v28 }
 0x488   :  { %v523_v33 = vsel %vm522_vm3, %v521_v32, -inf }
 0x489   :  { %524 = vmax.xlane.f32.xlu1 %v523_v33 }
 0x48b   :  { %v506_v34 = vpop.f32.mrf.mxu3 }
 0x4fc   :  { %v525_v35 = vpop.xlane.xlu1 %524 }
 0x4fd   :  { %v526_v36 = vsub.f32 %v521_v32, %v525_v35  ;;  %v544_v42 = vadd.f32 %v543_v41, %v525_v35 }
 0x4ff   :  { %v527_v37 = vmul.f32 1.442695, %v526_v36  ;;  %v545_v45 = vadd.f32 %v544_v42, %v221_v43 }
 0x501   :  { %734 = vpow2.f32 %v527_v37 }
 0x507   :  { %v735_v38 = vpop.eup %734 }
 0x508   :  { %v529_v39 = vpack.c.bf16 %v735_v38, %v735_v38 }
 0x50a   :  { %538 = vmatmul.bf16.vlgmr.msra.gmra.mxu1 %v529_v39 }
 0x587   :  { %v539_v40 = vpop.f32.mrf.mxu1 }
 0x588   :  { %736 = vlog2.f32 %v539_v40 }
 0x58e   :  { %v737_v44 = vpop.eup %736 }
 0x58f   :  { %v547_v46 = vmul.f32 0.6931472, %v737_v44  ;;  %v541_v47 = vpop.f32.mrf.mxu1 }
 0x591   :  { %v548_v48 = vadd.f32 %v547_v46, %v545_v45 }
 0x593   :  { %549 = vst [vmem:[#allocation11] sm:$0x1] %v548_v48 }
 0x594   :  { %562 = dma.vmem_to_hbm [thread:$0]  %s555_s14, 512, %s557_s17, [#allocation4], %s898_s18, %s898_s18, %s899_s19  }
 0x595   :  { %888 = dma.done.wait [#allocation4], 512  }
 0x596   :  { %889 = vsyncadd [#allocation4], 4294966784 }
 0x597   :  { %567 = vsyncpa [#allocation3], 1 }
 0x598   :  { %568 = vsyncpa [#allocation6], 1 }
 0x599   :  { %569 = vsyncpa [#allocation9], 1 }
 0x59a   :  { %570 = vsyncpa [#allocation4], 1 }

</bundles_post_ra>
